<compile_context>
chip_gen: v6e
topology: v6e:2x2x1
jax: 0.10.0
libtpu: 0.0.40
codegen_flags: <defaults>
</compile_context>

<pallas_src>
import jax
import jax.numpy as jnp
from jax.experimental import pallas as pl
from jax.experimental.pallas import tpu as pltpu

LN_EPS = 1e-5


def _round_up(x, m):
    return ((x + m - 1) // m) * m


def _sgating_kernel(x_ref, b_ref, w_ref, o_ref):
    # x_ref: (tm, 2D)       res in [:, :D], gate in [:, D:]
    # b_ref: (1, D)  f32    folded bias: ln_bias @ W.T + conv_bias
    # w_ref: (D, D)  bf16   folded weight: ln_weight[:, None] * W.T
    # o_ref: (tm, D)
    D = w_ref.shape[0]

    # LayerNorm statistics in f32 (affine folded into the matmul); two-pass
    # variance avoids catastrophic cancellation of E[x^2] - mean^2.
    g = x_ref[:, D:].astype(jnp.float32)
    mean = jnp.mean(g, axis=-1, keepdims=True)
    cen = g - mean
    var = jnp.mean(cen * cen, axis=-1, keepdims=True)
    g_hat = cen * jax.lax.rsqrt(var + LN_EPS)

    # 1x1 Conv1d over channels == per-token linear: bf16 operands, f32 accumulate.
    proj = jnp.dot(g_hat.astype(w_ref.dtype), w_ref[...],
                   preferred_element_type=jnp.float32) + b_ref[...]

    # Load `res` only now (short live range across the LN + matmul region).
    res = x_ref[:, :D].astype(jnp.float32)
    o_ref[...] = (res * proj).astype(o_ref.dtype)


def sgating_forward(x, ln_weight, ln_bias, conv_weight, conv_bias, *,
                    tm=2048, out_dtype=None):
    """x: (B, N, dim) with dim // 2 == 256 (Conv1d in_channels is hardcoded).

    conv_weight: (D, D, 1), conv_bias: (D,), ln_weight/ln_bias: (D,).
    """
    B, N, dim = x.shape
    assert dim % 2 == 0
    D = dim // 2
    assert conv_weight.shape == (D, D, 1) and conv_bias.shape == (D,)
    assert D % 128 == 0
    assert tm % 8 == 0
    out_dtype = x.dtype if out_dtype is None else out_dtype

    M = B * N
    x2 = x.reshape(M, dim)                      # contiguous reshape: no HBM copy

    # Row tile: as large as requested, but small enough that the 1-D "parallel"
    # grid has >= 2 steps (so both v7x TensorCores get work even for small M).
    # No padding copy: Pallas masks the ragged last block.
    tm_eff = max(8, min(tm, _round_up(-(-M // 2), 8)))
    grid = pl.cdiv(M, tm_eff)

    # Fold LN affine + conv bias into the matmul once, outside the grid loop.
    w_t = conv_weight[:, :, 0].T.astype(jnp.float32)                # (D_in, D_out)
    w_folded = (ln_weight.astype(jnp.float32)[:, None] * w_t).astype(jnp.bfloat16)
    b_folded = (ln_bias.astype(jnp.float32) @ w_t
                + conv_bias.astype(jnp.float32)).reshape(1, D)      # f32

    out_flat = pl.pallas_call(
        _sgating_kernel,
        out_shape=jax.ShapeDtypeStruct((M, D), out_dtype),
        grid_spec=pltpu.PrefetchScalarGridSpec(
            num_scalar_prefetch=0,
            grid=(grid,),
            in_specs=[
                pl.BlockSpec((tm_eff, dim), lambda i: (i, 0)),  # [res | gate] rows
                pl.BlockSpec((1, D), lambda i: (0, 0)),         # folded bias (resident)
                pl.BlockSpec((D, D), lambda i: (0, 0)),         # folded W.T (bf16, resident)
            ],
            out_specs=pl.BlockSpec((tm_eff, D), lambda i: (i, 0)),
        ),
        compiler_params=pltpu.CompilerParams(
            dimension_semantics=("parallel",),
            vmem_limit_bytes=48 * 1024 * 1024,
        ),
    )(x2, b_folded, w_folded)

    return out_flat.reshape(B, N, D)


def sgating_reference(x, ln_weight, ln_bias, conv_weight, conv_bias):
    B, N, dim = x.shape
    D = dim // 2
    res, gate = x[..., :D], x[..., D:]
    mean = jnp.mean(gate, axis=-1, keepdims=True)
    var = jnp.mean((gate - mean) ** 2, axis=-1, keepdims=True)
    g = (gate - mean) / jnp.sqrt(var + LN_EPS) * ln_weight + ln_bias
    g = jnp.einsum("bnd,od->bno", g, conv_weight[:, :, 0]) + conv_bias
    return res * g


if __name__ == "__main__":
    # The module's forward requires dim // 2 == 256 (Conv1d in_channels hardcoded).
    B, N, dim = 2, 8, 512
    D = dim // 2

    key = jax.random.PRNGKey(0)
    kx, kw, kb, klw, klb = jax.random.split(key, 5)
    x = jax.random.normal(kx, (B, N, dim), dtype=jnp.float32)

    # 1) Parameters exactly as in __init__ (zero conv weight, ones conv bias,
    #    default LN affine) -> projection is exactly 1 -> output == res.
    ln_w = jnp.ones((D,), jnp.float32)
    ln_b = jnp.zeros((D,), jnp.float32)
    cw = jnp.zeros((D, D, 1), jnp.float32)
    cb = jnp.ones((D,), jnp.float32)

    out = jax.block_until_ready(sgating_forward(x, ln_w, ln_b, cw, cb))
    ref = sgating_reference(x, ln_w, ln_b, cw, cb)
    assert out.shape == (B, N, D)
    assert jnp.allclose(out, ref, atol=1e-5, rtol=1e-5)

    # 2) Random parameters to exercise the bf16-operand MXU path.
    bound = 1.0 / (D ** 0.5)
    cw_r = jax.random.uniform(kw, (D, D, 1), jnp.float32, minval=-bound, maxval=bound)
    cb_r = jax.random.uniform(kb, (D,), jnp.float32, minval=-bound, maxval=bound)
    ln_w_r = 1.0 + 0.1 * jax.random.normal(klw, (D,), jnp.float32)
    ln_b_r = 0.1 * jax.random.normal(klb, (D,), jnp.float32)

    out_r = jax.block_until_ready(sgating_forward(x, ln_w_r, ln_b_r, cw_r, cb_r))
    ref_r = sgating_reference(x, ln_w_r, ln_b_r, cw_r, cb_r)
    assert jnp.allclose(out_r, ref_r, atol=5e-2, rtol=5e-2)  # bf16 MXU operands

    # 3) Optional bf16 output (cuts output HBM traffic when the consumer is bf16).
    out_bf = jax.block_until_ready(
        sgating_forward(x, ln_w_r, ln_b_r, cw_r, cb_r, out_dtype=jnp.bfloat16))
    assert out_bf.dtype == jnp.bfloat16
    assert jnp.allclose(out_bf.astype(jnp.float32), ref_r, atol=1e-1, rtol=1e-1)

    print("KERNEL_OK")
</pallas_src>

<mosaic_0001>
module attributes {stable_mosaic.version = 11 : i64} {
  func.func @_sgating_kernel(%arg0: i32, %arg1: memref<8x512xf32, #tpu.memory_space<vmem>>, %arg2: memref<1x256xf32, #tpu.memory_space<vmem>>, %arg3: memref<256x256xbf16, #tpu.memory_space<vmem>>, %arg4: memref<8x256xf32, #tpu.memory_space<vmem>>) attributes {dimension_semantics = [#tpu.dimension_semantics<parallel>], iteration_bounds = array<i64: 2>, scalar_prefetch = 0 : i64, scratch_operands = 0 : i64, tpu.core_type = #tpu.core_type<tc>, window_params = [{transform_indices = @transform_0, window_bounds = array<i64: 8, 512>}, {pipeline_mode = #tpu.pipeline_mode<synchronous>, transform_indices = @transform_1, window_bounds = array<i64: 1, 256>}, {pipeline_mode = #tpu.pipeline_mode<synchronous>, transform_indices = @transform_2, window_bounds = array<i64: 256, 256>}, {transform_indices = @transform_3, window_bounds = array<i64: 8, 256>}]} {
    %c0 = arith.constant 0 : index
    %c256 = arith.constant 256 : index
    %0 = vector.load %arg1[%c0, %c256] : memref<8x512xf32, #tpu.memory_space<vmem>>, vector<8x256xf32>
    %cst = arith.constant dense<0.000000e+00> : vector<8xf32>
    %1 = vector.multi_reduction <add>, %0, %cst [1] : vector<8x256xf32> to vector<8xf32>
    %2 = vector.shape_cast %1 : vector<8xf32> to vector<8x1xf32>
    %cst_0 = arith.constant 2.560000e+02 : f32
    %3 = vector.broadcast %cst_0 : f32 to vector<8x1xf32>
    %4 = arith.divf %2, %3 : vector<8x1xf32>
    %5 = vector.broadcast %4 : vector<8x1xf32> to vector<8x256xf32>
    %6 = arith.subf %0, %5 : vector<8x256xf32>
    %7 = arith.mulf %6, %6 : vector<8x256xf32>
    %cst_1 = arith.constant dense<0.000000e+00> : vector<8xf32>
    %8 = vector.multi_reduction <add>, %7, %cst_1 [1] : vector<8x256xf32> to vector<8xf32>
    %9 = vector.shape_cast %8 : vector<8xf32> to vector<8x1xf32>
    %cst_2 = arith.constant 2.560000e+02 : f32
    %10 = vector.broadcast %cst_2 : f32 to vector<8x1xf32>
    %11 = arith.divf %9, %10 : vector<8x1xf32>
    %cst_3 = arith.constant 9.99999974E-6 : f32
    %12 = vector.broadcast %cst_3 : f32 to vector<8x1xf32>
    %13 = arith.addf %11, %12 : vector<8x1xf32>
    %14 = math.rsqrt %13 : vector<8x1xf32>
    %15 = vector.broadcast %14 : vector<8x1xf32> to vector<8x256xf32>
    %16 = arith.mulf %6, %15 : vector<8x256xf32>
    %17 = arith.truncf %16 : vector<8x256xf32> to vector<8x256xbf16>
    %c0_4 = arith.constant 0 : index
    %c0_5 = arith.constant 0 : index
    %18 = vector.load %arg3[%c0_4, %c0_5] : memref<256x256xbf16, #tpu.memory_space<vmem>>, vector<256x256xbf16>
    %cst_6 = arith.constant dense<0.000000e+00> : vector<8x256xf32>
    %19 = tpu.matmul %17, %18, %cst_6 {dimension_numbers = #tpu.dot_dimension_numbers<[1], [0], [0], [1], [0, 0, 1, 1], [], []>} : vector<8x256xbf16>, vector<256x256xbf16>, vector<8x256xf32> -> vector<8x256xf32>
    %c0_7 = arith.constant 0 : index
    %c0_8 = arith.constant 0 : index
    %20 = vector.load %arg2[%c0_7, %c0_8] : memref<1x256xf32, #tpu.memory_space<vmem>>, vector<1x256xf32>
    %21 = vector.broadcast %20 : vector<1x256xf32> to vector<8x256xf32>
    %22 = arith.addf %19, %21 : vector<8x256xf32>
    %c0_9 = arith.constant 0 : index
    %c0_10 = arith.constant 0 : index
    %23 = vector.load %arg1[%c0_9, %c0_10] : memref<8x512xf32, #tpu.memory_space<vmem>>, vector<8x256xf32>
    %24 = arith.mulf %23, %22 : vector<8x256xf32>
    %c0_11 = arith.constant 0 : index
    %c0_12 = arith.constant 0 : index
    %25 = vector.load %arg4[%c0_11, %c0_12] : memref<8x256xf32, #tpu.memory_space<vmem>>, vector<8x256xf32>
    tpu.vector_store %arg4[%c0_11, %c0_12], %24 {strides = array<i32>} : memref<8x256xf32, #tpu.memory_space<vmem>>, vector<8x256xf32>,
    return
  }
  func.func @transform_0(%arg0: i32) -> (i32, i32) {
    %c0_i32 = arith.constant 0 : i32
    %c0_i32_0 = arith.constant 0 : i32
    return %arg0, %c0_i32 : i32, i32
  }
  func.func @transform_1(%arg0: i32) -> (i32, i32) {
    %c0_i32 = arith.constant 0 : i32
    %c0_i32_0 = arith.constant 0 : i32
    %c0_i32_1 = arith.constant 0 : i32
    return %c0_i32, %c0_i32_0 : i32, i32
  }
  func.func @transform_2(%arg0: i32) -> (i32, i32) {
    %c0_i32 = arith.constant 0 : i32
    %c0_i32_0 = arith.constant 0 : i32
    %c0_i32_1 = arith.constant 0 : i32
    return %c0_i32, %c0_i32_0 : i32, i32
  }
  func.func @transform_3(%arg0: i32) -> (i32, i32) {
    %c0_i32 = arith.constant 0 : i32
    %c0_i32_0 = arith.constant 0 : i32
    return %arg0, %c0_i32 : i32, i32
  }
}

</mosaic_0001>

<bundles_post_ra>
// kernel: tpu_custom_call.1
= control target key start
LH: loop header
LB: loop body
LE: loop exit
PB: predicated region body
PF: predicated region fallthrough
CT: control target
= control target key end

     0   :  { %8 = vsyncpa [#allocation3], 0  ;;  %s1115_s0 = inlined_call_operand.hbm [shape: f32[16,512], index: 0, kind: input, shape index: {}]   ;;  %s1116_s1 = inlined_call_operand.hbm [shape: f32[1,256], index: 1, kind: input, shape index: {}]   ;;  %s1117_s2 = inlined_call_operand.hbm [shape: bf16[256,256], index: 2, kind: input, shape index: {}]   ;;  %s1118_s3 = inlined_call_operand.hbm [shape: f32[16,256], index: 3, kind: output, shape index: {}]  }
   0x1   :  { %10 = vsyncpa [#allocation3 + $0x1], 0 }
   0x2   :  { %11 = vsyncpa [#allocation6], 0 }
   0x3   :  { %12 = vsyncpa [#allocation4], 0 }
   0x4   :  { %14 = vsyncpa [#allocation4 + $0x1], 0  ;;  %s937_s12 = smov 0   ;;  %s939_s13 = smov 0  }
   0x5   :  { %s941_s14 = smov 0   ;;  %s943_s15 = smov 0  }
   0x6 LB: > { %s958_s16 = sadd.s32 4294967295, %s909_s15   ;;  %s590_s17 = sadd.s32 4294967294, %s909_s15   ;;  %s909_s15 = sphi %s943_s15, %s1140_s15   ;;  %s905_s14 = sphi %s941_s14, %s1139_s14   ;;  %s901_s13 = sphi %s939_s13, %s1138_s13   ;;  %s897_s12 = sphi %s937_s12, %s1137_s12  }
   0x7   : > { %p40_p0 = scmp.ne.s32.totalorder %s901_s13, %s897_s12  ;;  %p1119_p1 = scmp.eq.s32.totalorder %s958_s16, 0 }
   0x8   : > { %p112_p3 = scmp.eq.s32.totalorder %s590_s17, 1  ;;  %p591_p5 = scmp.ge.s32.totalorder %s909_s15, 1 }
   0x9   : > { %p967_p4 = por %p1119_p1, %p40_p0  ;;  %p119_p7 = scmp.lt.s32.totalorder %s909_s15, 3 }
   0xa   : > { %p972_p6 = por %p112_p3, %p40_p0  ;;  %s911_s21 = smov [#allocation5]  }
   0xb   : > { %s1123_s18 = scalar_select %p967_p4, 1, 0 }
   0xc   : > { %s1124_s19 = scalar_select %p972_p6, 1, 0 }
   0xd   : > { %p977_p8 = pnand %p591_p5, %p119_p7  ;;  %s132_s22 = sshll.u32 %s911_s21, 4  ;;  %s133_s22 = int_to_ptr.vmem [resolvable:$true] %s132_s22 }
   0xe   : > { %s912_s23 = smov [#allocation7]   ;;  %s772_s26 = scalar_lea.vmem %s133_s22, 32 }
   0xf   : > { %s1125_s20 = scalar_select %p977_p8, 1, 0 }
  0x10   : > { %p654_p10 = pneg %p977_p8  ;;  %s142_s24 = sshll.u32 %s912_s23, 4  ;;  %s143_s24 = int_to_ptr.vmem [resolvable:$true] %s142_s24 }
  0x11   : > { %p773_p13 = scmp.ne.s32.totalorder %s133_s22, %s772_s26  ;;  %p780_p5 = scmp.lt.s32.totalorder %s133_s22, %s133_s22 }
  0x12   : > { %p986_p11 = pnand %p654_p10, %p1119_p1  ;;  %p781_p7 = scmp.lt.s32.totalorder %s772_s26, %s772_s26 }
  0x14   : > { %p763_p12 = pneg %p986_p11  ;;  %p782_p9 = por %p781_p7, %p780_p5 }
  0x16   : > { %p775_p0 = pnand %p773_p13, %p763_p12 }
  0x18   : > { %p776_p3 = pneg %p775_p0 }
  0x1a   : > { %p783_p2 = pnand %p782_p9, %p776_p3 }
  0x1c   : > { %786 = shalt.err (!%p783_p2)
}
  0x1d   : > { %657 = dma.hbm_to_vmem [thread:$0]  (!%p986_p11), %s1116_s1, 32, %s133_s22, [#allocation6]  }
  0x1e   : > { %s798_s29 = scalar_lea.vmem %s143_s24, 4096  ;;  %p806_p13 = scmp.lt.s32.totalorder %s143_s24, %s143_s24 }
  0x1f   : > { %p799_p10 = scmp.ne.s32.totalorder %s143_s24, %s798_s29  ;;  %p807_p0 = scmp.lt.s32.totalorder %s798_s29, %s798_s29 }
  0x21   : > { %p801_p1 = pnand %p799_p10, %p763_p12  ;;  %p808_p4 = por %p807_p0, %p806_p13 }
  0x23   : > { %p802_p6 = pneg %p801_p1 }
  0x25   : > { %p809_p8 = pnand %p808_p4, %p802_p6 }
  0x27   : > { %812 = shalt.err (!%p809_p8)
}
  0x28   : > { %s913_s30 = smov 128   ;;  %s914_s4 = smov 8  }
  0x29   : > { %660 = dma.hbm_to_vmem [thread:$0]  (!%p986_p11), %s1117_s2, 4096, %s143_s24, [#allocation6], %s913_s30, %s913_s30, %s914_s4  }
  0x2a   : > { %s1009_s7 = sadd.s32 1, %s909_s15   ;;  %s27_s8 = sadd.s32 1, %s905_s14 }
  0x2b   : > { %s24_s9 = ssub.s32 %s909_s15, %s1009_s7  ;;  %p34_p1 = scmp.ne.s32.totalorder %s905_s14, %s901_s13 }
  0x2c   : > { %p25_p2 = scmp.eq.s32.totalorder %s24_s9, 0  ;;  %p35_p4 = scmp.eq.s32.totalorder %s909_s15, 0 }
  0x2d   : > { %p1127_p6 = scmp.eq.s32.totalorder %s958_s16, 1  ;;  %p671_p9 = scmp.lt.s32.totalorder %s909_s15, 2 }
  0x2e   : > { %s1025_s11 = scalar_select %p25_p2, %s905_s14, %s27_s8  }
  0x2f   : > { %p1019_p8 = por %p1127_p6, %p34_p1  ;;  %p36_p12 = por %p35_p4, %p34_p1 }
  0x30   : > { %s156_s17 = sand.u32 1, %s905_s14   ;;  %s640_s22 = sshll.u32 %s909_s15, 9 }
  0x31   : > { %s1128_s10 = scalar_select %p1019_p8, 1, 0 }
  0x32   : > { %s595_s21 = sshll.u32 %s156_s17, 5  ;;  %s1032_s25 = scalar_lea.hbm %s1115_s0, %s640_s22 }
  0x33   : > { %s160_s26 = scalar_lea.vmem [#allocation2], %s595_s21  ;;  %p1034_p11 = pnand %p671_p9, %p36_p12 }
  0x34   : > { %s168_s27 = sshll.u32 %s160_s26, 4  ;;  %s157_s29 = scalar_lea.sflag [#allocation3], %s156_s17  ;;  %s169_s27 = int_to_ptr.vmem [resolvable:$true] %s168_s27 }
  0x35   : > { %s813_s30 = scalar_lea.hbm %s1032_s25, 512  ;;  %p815_p5 = pneg %p1034_p11 }
  0x36   : > { %p814_p3 = scmp.ne.s32.totalorder %s1032_s25, %s813_s30  ;;  %s818_s6 = scalar_lea.hbm %s1115_s0, 1024 }
  0x37   : > { %p819_p13 = scmp.lt.s32.totalorder %s1032_s25, %s1115_s0  ;;  %p820_p0 = scmp.lt.s32.totalorder %s818_s6, %s813_s30 }
  0x38   : > { %p816_p7 = pnand %p815_p5, %p814_p3 }
  0x39   : > { %p821_p1 = por %p820_p0, %p819_p13 }
  0x3a   : > { %p817_p10 = pneg %p816_p7 }
  0x3c   : > { %p822_p2 = pnand %p821_p1, %p817_p10 }
  0x3e   : > { %825 = shalt.err (!%p822_p2)
}
  0x3f   : > { %s826_s21 = scalar_lea.vmem %s169_s27, 512  ;;  %s915_s17 = smov [#allocation2]  }
  0x40   : > { %p827_p4 = scmp.ne.s32.totalorder %s169_s27, %s826_s21  ;;  %s831_s22 = sshll.u32 %s915_s17, 4  ;;  %s832_s22 = int_to_ptr.vmem [resolvable:$false] %s831_s22 }
  0x41   : > { %s833_s23 = scalar_lea.vmem %s832_s22, 1024  ;;  %p834_p12 = scmp.lt.s32.totalorder %s169_s27, %s832_s22 }
  0x42   : > { %p829_p6 = pnand %p827_p4, %p815_p5  ;;  %p835_p3 = scmp.lt.s32.totalorder %s833_s23, %s826_s21 }
  0x44   : > { %p830_p9 = pneg %p829_p6  ;;  %p836_p7 = por %p835_p3, %p834_p12 }
  0x46   : > { %p837_p8 = pnand %p836_p7, %p830_p9 }
  0x48   : > { %840 = shalt.err (!%p837_p8)
}
  0x49   : > { %664 = dma.hbm_to_vmem [thread:$0]  (!%p1034_p11), %s1032_s25, 512, %s169_s27, %s157_s29  }
  0x4a   : > { %p1130_p10 = scmp.ne.s32.totalorder %s1125_s20, 0 }
  0x4b   : > { %s1055_s24 = sand.u32 (!%p1130_p10), 1, %s901_s13   ;;  %p1131_p5 = scmp.ne.s32.totalorder (!%p1130_p10), %s1123_s18, 0 }
  0x4c   : > { %177 = sbr.rel (%p1130_p10) target bundleno = 607 (0x25f), region = 32  ;;  %s599_s26 = sshll.u32 (!%p1130_p10), %s1055_s24, 5 }
  0x4d   : > { %s180_s30 = scalar_lea.sflag (!%p1130_p10), [#allocation3], %s1055_s24  ;;  %s1059_s4 = scalar_lea.vmem (!%p1130_p10), [#allocation2], %s599_s26 }
  0x51   : > { %884 = dma.done.wait (%p1131_p5), %s180_s30, 512  }
  0x52   : > { %886 = vsyncadd (%p1131_p5), %s180_s30, 4294966784  ;;  %p1132_p8 = scmp.eq.s32.totalorder %s958_s16, 0 }
  0x54   : > { %888 = dma.done.wait (%p1132_p8), [#allocation6], 4128   ;;  %p1133_p11 = pmov %p1132_p8 }
  0x55   : > { %v214_v0 = vld [vmem:[%s1059_s4 + $0x10] sm:$0xff]  ;;  %v215_v1 = vld [vmem:[%s1059_s4 + $0x18] sm:$0xff]  ;;  %v716_v6 = vld [vmem:[#allocation7 + $0x60] ss:$8 sps:$4 sm:$0xff]   ;;  %v269_v50 = vlaneseq  ;;  %s602_s18 = sshll.u32 %s1055_s24, 4  ;;  %s641_s20 = sshll.u32 %s958_s16, 8 }
  0x56   : > { %890 = vsyncadd (%p1133_p11), [#allocation6], 4294963168  ;;  %v216_v2 = vadd.f32 %v215_v1, %v214_v0  ;;  %v711_v3 = vld [vmem:[#allocation7 + $0x74] ss:$8 sps:$4 sm:$0xff]   ;;  %v713_v4 = vld [vmem:[#allocation7 + $0x70] ss:$8 sps:$4 sm:$0xff]   ;;  %s1078_s5 = scalar_lea.hbm %s1118_s3, %s641_s20 }
  0x57   : > { %v714_v5 = vld [vmem:[#allocation7 + $0x64] ss:$8 sps:$4 sm:$0xff]   ;;  %439 = vmatprep.subr.bf16.mxu0 %v711_v3  ;;  %v717_v7 = vld [vmem:[#allocation7 + $0x54] ss:$8 sps:$4 sm:$0xff]   ;;  %v719_v8 = vld [vmem:[#allocation7 + $0x50] ss:$8 sps:$4 sm:$0xff]  }
  0x58   : > { %217 = vadd.xlane.f32.xlu0 %v216_v2  ;;  %440 = vmatpush1.bf16.msra.mxu0 %v713_v4  ;;  %v720_v9 = vld [vmem:[#allocation7 + $0x44] ss:$8 sps:$4 sm:$0xff]   ;;  %v722_v10 = vld [vmem:[#allocation7 + $0x40] ss:$8 sps:$4 sm:$0xff]   ;;  %v723_v11 = vld [vmem:[#allocation7 + $0x34] ss:$8 sps:$4 sm:$0xff]  }
  0x59   : > { %441 = vmatprep.subr.bf16.mxu0 %v714_v5  ;;  %v725_v12 = vld [vmem:[#allocation7 + $0x30] ss:$8 sps:$4 sm:$0xff]   ;;  %v726_v13 = vld [vmem:[#allocation7 + $0x24] ss:$8 sps:$4 sm:$0xff]   ;;  %v728_v14 = vld [vmem:[#allocation7 + $0x20] ss:$8 sps:$4 sm:$0xff]  }
  0x5a   : > { %v729_v15 = vld [vmem:[#allocation7 + $0x14] ss:$8 sps:$4 sm:$0xff]   ;;  %v731_v16 = vld [vmem:[#allocation7 + $0x10] ss:$8 sps:$4 sm:$0xff]   ;;  %v732_v17 = vld [vmem:[#allocation7 + $0x4] ss:$8 sps:$4 sm:$0xff]  }
  0x5b   : > { %v734_v18 = vld [vmem:[#allocation7] ss:$8 sps:$4 sm:$0xff]   ;;  %v735_v19 = vld [vmem:[#allocation7 + $0xf4] ss:$8 sps:$4 sm:$0xff]   ;;  %v737_v20 = vld [vmem:[#allocation7 + $0xf0] ss:$8 sps:$4 sm:$0xff]  }
  0x5c   : > { %442 = vmatpush1.bf16.msra.mxu0 %v716_v6  ;;  %v738_v21 = vld [vmem:[#allocation7 + $0xe4] ss:$8 sps:$4 sm:$0xff]   ;;  %v740_v22 = vld [vmem:[#allocation7 + $0xe0] ss:$8 sps:$4 sm:$0xff]   ;;  %v741_v23 = vld [vmem:[#allocation7 + $0xd4] ss:$8 sps:$4 sm:$0xff]  }
  0x5d   : > { %443 = vmatprep.subr.bf16.mxu0 %v717_v7  ;;  %v743_v31 = vld [vmem:[#allocation7 + $0xd0] ss:$8 sps:$4 sm:$0xff]   ;;  %v744_v32 = vld [vmem:[#allocation7 + $0xc4] ss:$8 sps:$4 sm:$0xff]   ;;  %v746_v33 = vld [vmem:[#allocation7 + $0xc0] ss:$8 sps:$4 sm:$0xff]  }
  0x5e   : > { %v747_v34 = vld [vmem:[#allocation7 + $0xb4] ss:$8 sps:$4 sm:$0xff]   ;;  %v749_v35 = vld [vmem:[#allocation7 + $0xb0] ss:$8 sps:$4 sm:$0xff]   ;;  %v750_v36 = vld [vmem:[#allocation7 + $0xa4] ss:$8 sps:$4 sm:$0xff]  }
  0x5f   : > { %v752_v37 = vld [vmem:[#allocation7 + $0xa0] ss:$8 sps:$4 sm:$0xff]   ;;  %v753_v38 = vld [vmem:[#allocation7 + $0x94] ss:$8 sps:$4 sm:$0xff]   ;;  %v755_v39 = vld [vmem:[#allocation7 + $0x90] ss:$8 sps:$4 sm:$0xff]  }
  0x60   : > { %444 = vmatpush1.bf16.msra.mxu0 %v719_v8  ;;  %v756_v40 = vld [vmem:[#allocation7 + $0x84] ss:$8 sps:$4 sm:$0xff]   ;;  %v758_v41 = vld [vmem:[#allocation7 + $0x80] ss:$8 sps:$4 sm:$0xff]   ;;  %v270_v51 = vshrl.u32 %v269_v50, 7  ;;  %s213_s25 = scalar_lea.vmem [#allocation8], %s602_s18 }
  0x61   : > { %445 = vmatprep.subr.bf16.mxu0 %v720_v9  ;;  %v267_v53 = vld [vmem:[#allocation5] sm:$0x3]  ;;  %v481_v61 = vld [vmem:[%s1059_s4 + $0x8] sm:$0xff]  ;;  %s501_s27 = sshll.u32 %s213_s25, 4  ;;  %s487_s6 = scalar_lea.sflag [#allocation4], %s1055_s24  ;;  %s502_s27 = int_to_ptr.vmem [resolvable:$true] %s501_s27 }
  0x62   : > { %v271_v52 = vsub.s32 0, %v270_v51  ;;  %v275_v54 = vsub.s32 1, %v270_v51  ;;  %v480_v58 = vld [vmem:[%s1059_s4] sm:$0xff]  ;;  %s841_s8 = scalar_lea.vmem %s502_s27, 256  ;;  %p1134_p0 = scmp.ne.s32.totalorder %s1128_s10, 0 }
  0x63   : > { %p842_p13 = scmp.ne.s32.totalorder %s502_s27, %s841_s8  ;;  %s916_s16 = smov [#allocation8]  }
  0x64   : > { %446 = vmatpush1.bf16.msra.mxu0 %v722_v10  ;;  %v272_v55 = vrot.slane %v267_v53, %v271_v52  ;;  %v276_v56 = vrot.slane %v267_v53, %v275_v54  ;;  %s845_s9 = sshll.u32 %s916_s16, 4  ;;  %s846_s9 = int_to_ptr.vmem [resolvable:$false] %s845_s9 }
  0x65   : > { %447 = vmatprep.subr.bf16.mxu0 %v723_v11  ;;  %p843_p1 = pnand %p842_p13, %p1134_p0  ;;  %s847_s21 = scalar_lea.vmem %s846_s9, 512 }
  0x66   : > { %p848_p4 = scmp.lt.s32.totalorder %s502_s27, %s846_s9  ;;  %p849_p6 = scmp.lt.s32.totalorder %s847_s21, %s841_s8 }
  0x67   : > { %p844_p2 = pneg %p843_p1 }
  0x68   : > { %448 = vmatpush1.bf16.msra.mxu0 %v725_v12  ;;  %p850_p9 = por %p849_p6, %p848_p4 }
  0x69   : > { %449 = vmatprep.subr.bf16.mxu0 %v726_v13 }
  0x6a   : > { %p851_p12 = pnand %p850_p9, %p844_p2 }
  0x6c   : > { %450 = vmatpush1.bf16.msra.mxu0 %v728_v14 }
  0x6d   : > { %451 = vmatprep.subr.bf16.mxu0 %v729_v15 }
  0x70   : > { %452 = vmatpush1.bf16.msra.mxu0 %v731_v16 }
  0x71   : > { %453 = vmatprep.subr.bf16.mxu0 %v732_v17 }
  0x74   : > { %454 = vmatpush1.bf16.msra.mxu0 %v734_v18 }
  0x75   : > { %455 = vmatprep.subr.bf16.mxu0 %v735_v19 }
  0x78   : > { %456 = vmatpush2.bf16.msra.mxu0 %v737_v20 }
  0x79   : > { %457 = vmatprep.subr.bf16.mxu0 %v738_v21 }
  0x7c   : > { %458 = vmatpush2.bf16.msra.mxu0 %v740_v22 }
  0x7d   : > { %459 = vmatprep.subr.bf16.mxu0 %v741_v23 }
  0x80   : > { %460 = vmatpush2.bf16.msra.mxu0 %v743_v31 }
  0x81   : > { %461 = vmatprep.subr.bf16.mxu0 %v744_v32 }
  0x84   : > { %462 = vmatpush2.bf16.msra.mxu0 %v746_v33 }
  0x85   : > { %463 = vmatprep.subr.bf16.mxu0 %v747_v34 }
  0x88   : > { %464 = vmatpush2.bf16.msra.mxu0 %v749_v35 }
  0x89   : > { %465 = vmatprep.subr.bf16.mxu0 %v750_v36 }
  0x8c   : > { %466 = vmatpush2.bf16.msra.mxu0 %v752_v37 }
  0x8d   : > { %467 = vmatprep.subr.bf16.mxu0 %v753_v38 }
  0x90   : > { %468 = vmatpush2.bf16.msra.mxu0 %v755_v39 }
  0x91   : > { %469 = vmatprep.subr.bf16.mxu0 %v756_v40 }
  0x94   : > { %470 = vmatpush2.bf16.msra.mxu0 %v758_v41 }
  0xe1   : > { %v218_v24 = vpop.xlane.xlu0 %217 }
  0xe2   : > { %v220_v25 = vmul.f32 0.00390625, %v218_v24 }
  0xe4   : > { %v221_v26 = vsub.f32 %v214_v0, %v220_v25  ;;  %v222_v27 = vsub.f32 %v215_v1, %v220_v25 }
  0xe6   : > { %v223_v28 = vmul.f32 %v221_v26, %v221_v26  ;;  %v224_v29 = vmul.f32 %v222_v27, %v222_v27 }
  0xe8   : > { %v225_v30 = vadd.f32 %v224_v29, %v223_v28 }
  0xea   : > { %226 = vadd.xlane.f32.xlu0 %v225_v30 }
 0x173   : > { %v227_v42 = vpop.xlane.xlu0 %226 }
 0x174   : > { %v228_v43 = vmul.f32 0.00390625, %v227_v42 }
 0x176   : > { %v229_v44 = vadd.f32 1e-05, %v228_v43 }
 0x178   : > { %759 = vrsqrt.f32 %v229_v44 }
 0x185   : > { %v760_v45 = vpop.eup %759 }
 0x186   : > { %v232_v46 = vmul.f32 %v760_v45, %v222_v27  ;;  %v231_v47 = vmul.f32 %v760_v45, %v221_v26 }
 0x188   : > { %v234_v48 = vpack.c.bf16 %v232_v46, %v232_v46  ;;  %v233_v49 = vpack.c.bf16 %v231_v47, %v231_v47 }
 0x18a   : > { %471 = vmatprep.mubr.bf16.mxu0 %v234_v48 }
 0x18b   : > { %472 = vmatmul.mubr.bf16.vlgmr.msra.gmra.mxu0 %v233_v49 }
 0x24b   : > { %v473_v57 = vpop.f32.mrf.mxu0 }
 0x24c   : > { %v474_v59 = vadd.f32 %v473_v57, %v272_v55 }
 0x24d   : > { %v475_v60 = vpop.f32.mrf.mxu0 }
 0x24e   : > { %v482_v62 = vmul.f32 %v480_v58, %v474_v59  ;;  %v476_v63 = vadd.f32 %v475_v60, %v276_v56 }
 0x24f   : > { %v477_v0 = vpop.f32.mrf.mxu0 }
 0x250   : > { %484 = vst [vmem:[%s213_s25] sm:$0xff] %v482_v62  ;;  %v483_v1 = vmul.f32 %v481_v61, %v476_v63 }
 0x251   : > { %v478_v2 = vpop.f32.mrf.mxu0 }
 0x252   : > { %485 = vst [vmem:[%s213_s25 + $0x8] sm:$0xff] %v483_v1 }
 0x253   : > { %854 = shalt.err (!%p851_p12)
}
 0x254   : > { %s855_s17 = scalar_lea.hbm %s1078_s5, 256  ;;  %s859_s24 = scalar_lea.hbm %s1118_s3, 512 }
 0x255   : > { %p856_p3 = scmp.ne.s32.totalorder %s1078_s5, %s855_s17  ;;  %p860_p5 = scmp.lt.s32.totalorder %s1078_s5, %s1118_s3 }
 0x256   : > { %p861_p8 = scmp.lt.s32.totalorder %s859_s24, %s855_s17 }
 0x257   : > { %p857_p7 = pnand %p856_p3, %p1134_p0 }
 0x258   : > { %p862_p11 = por %p861_p8, %p860_p5 }
 0x259   : > { %p858_p10 = pneg %p857_p7 }
 0x25b   : > { %p863_p13 = pnand %p862_p11, %p858_p10 }
 0x25d   : > { %866 = shalt.err (!%p863_p13)
}
 0x25e   : > { %652 = dma.vmem_to_hbm [thread:$0]  (%p1134_p0), %s502_s27, 256, %s1078_s5, %s487_s6  }
 0x25f PF: > { %s513_s4 = sand.u32 1, %s897_s12   ;;  %p1135_p1 = scmp.ne.s32.totalorder %s1124_s19, 0 }
 0x260   : > { %p1136_p2 = scmp.ge.s32.totalorder %s909_s15, 2  ;;  %s514_s18 = scalar_lea.sflag [#allocation4], %s513_s4 }
 0x262   : > { %p666_p4 = pnand %p1136_p2, %p1135_p1 }
 0x264   : > { %p667_p6 = pneg %p666_p4 }
 0x266   : > { %892 = dma.done.wait (%p667_p6), %s514_s18, 256  }
 0x267   : > { %894 = vsyncadd (%p667_p6), %s514_s18, 4294967040  ;;  %p17_p9 = scmp.ge.s32.totalorder %s1009_s7, 4   ;;  %s1137_s12 = smov %s901_s13 }
 0x268   : > { %s1138_s13 = smov %s905_s14  ;;  %s1139_s14 = smov %s1025_s11 }
 0x269   : > { %s1140_s15 = smov %s1009_s7  ;;  %19 = sbr.rel (!%p17_p9) target bundleno = 6 (0x6), region = 85 }
 0x26e   :  { %519 = vsyncpa [#allocation3], 1 }
 0x26f   :  { %521 = vsyncpa [#allocation3 + $0x1], 1 }
 0x270   :  { %522 = vsyncpa [#allocation6], 1 }
 0x271   :  { %523 = vsyncpa [#allocation4], 1 }
 0x272   :  { %525 = vsyncpa [#allocation4 + $0x1], 1 }

</bundles_post_ra>
